<compile_context>
chip_gen: v6e
topology: v6e:2x2x1
jax: 0.10.0
libtpu: 0.0.40
codegen_flags: <defaults>
</compile_context>

<pallas_src>
import math

import jax
import jax.numpy as jnp
from jax.experimental import pallas as pl
from jax.experimental.pallas import tpu as pltpu

BN_EPS = 1e-5
LANE = 128          # padded feature width for all hidden / output dims
D_IN = 88
H1 = 70
H2 = 54
H3 = 70
D_OUT = 88
N_CLASSES = 2
NEG_BIG = -1e30     # softmax mask value for padded class lanes


def _mtae_kernel(
    x_ref,
    w1_ref, b1_ref, g1_ref, be1_ref,
    w2_ref, b2_ref, g2_ref, be2_ref,
    w3_ref, b3_ref, g3_ref, be3_ref,
    wp_ref, bp_ref,
    wa_ref, ba_ref,
    xrec_ref, z_ref, logits_ref,
):
    inv_b = 1.0 / x_ref.shape[0]

    def dense_block(x, w_ref, b_ref, g_ref, be_ref):
        # Linear
        h = jnp.dot(x, w_ref[...], preferred_element_type=jnp.float32) + b_ref[...]
        # BatchNorm1d (training-mode stats) folded into scale/shift:
        #   mu = E[h], var = E[h^2] - mu^2 (biased), hn = h*scale + shift
        s = jnp.sum(h, axis=0, keepdims=True)
        ss = jnp.sum(h * h, axis=0, keepdims=True)
        mu = s * inv_b
        var = jnp.maximum(ss * inv_b - mu * mu, 0.0)
        scale = g_ref[...] * jax.lax.rsqrt(var + BN_EPS)   # EUP
        shift = be_ref[...] - mu * scale
        # ReLU
        return jnp.maximum(h * scale + shift, 0.0)

    x = x_ref[...]                                               # (B, 88)

    h1 = dense_block(x, w1_ref, b1_ref, g1_ref, be1_ref)         # (B, 128) [70 real]
    z = dense_block(h1, w2_ref, b2_ref, g2_ref, be2_ref)         # (B, 128) [54 real]
    h3 = dense_block(z, w3_ref, b3_ref, g3_ref, be3_ref)         # (B, 128) [70 real]

    # proj: Linear(70, 88) (padded to 128-wide output, pad cols are zero)
    x_rec = jnp.dot(h3, wp_ref[...], preferred_element_type=jnp.float32) + bp_ref[...]

    # aux: Linear(54, 2) padded to 128 lanes; mask pad lanes before softmax(dim=1)
    aux = jnp.dot(z, wa_ref[...], preferred_element_type=jnp.float32) + ba_ref[...]
    lane = jax.lax.broadcasted_iota(jnp.int32, aux.shape, 1)
    aux = jnp.where(lane < N_CLASSES, aux, jnp.float32(NEG_BIG))
    m = jnp.max(aux, axis=1, keepdims=True)
    e = jnp.exp(aux - m)                                         # pad lanes -> 0
    denom = jnp.sum(e, axis=1, keepdims=True)
    inv = pl.reciprocal(denom, approx=True)                      # EUP
    inv = inv * (2.0 - denom * inv)                              # 1 Newton step (near-exact)
    probs = e * inv

    xrec_ref[...] = x_rec
    z_ref[...] = z
    logits_ref[...] = probs


def _vmem_limit_bytes(batch, args):
    """Footprint-derived VMEM ask: inputs + outputs + intermediates, x2 margin."""
    in_bytes = sum(int(a.size) * 4 for a in args)
    out_bytes = 3 * batch * LANE * 4
    interm_bytes = 6 * batch * LANE * 4   # h1, z, h3, x_rec, aux, temporaries
    total = 2 * (in_bytes + out_bytes + interm_bytes) + (2 << 20)
    return int(min(max(total, 4 << 20), 64 << 20))


def multitask_autoencoder(x, pparams):
    """x: (B, 88) float32; pparams: lane-padded params (see pad_params).

    Returns (x_rec (B,88), z (B,54), logits (B,2)) matching the PyTorch module
    (BatchNorm in training mode, softmax probabilities for the aux head)."""
    B = x.shape[0]
    args = (
        x,
        pparams["w1"], pparams["b1"], pparams["g1"], pparams["be1"],
        pparams["w2"], pparams["b2"], pparams["g2"], pparams["be2"],
        pparams["w3"], pparams["b3"], pparams["g3"], pparams["be3"],
        pparams["wp"], pparams["bp"],
        pparams["wa"], pparams["ba"],
    )

    def full_spec(a):
        # whole array resident in VMEM, single grid point
        return pl.BlockSpec(a.shape, lambda: (0,) * len(a.shape))

    out_shapes = tuple(
        jax.ShapeDtypeStruct((B, LANE), jnp.float32) for _ in range(3)
    )
    out_specs = tuple(pl.BlockSpec((B, LANE), lambda: (0, 0)) for _ in range(3))

    x_rec_p, z_p, logits_p = pl.pallas_call(
        _mtae_kernel,
        out_shape=out_shapes,
        grid=(),
        in_specs=[full_spec(a) for a in args],
        out_specs=out_specs,
        compiler_params=pltpu.CompilerParams(
            vmem_limit_bytes=_vmem_limit_bytes(B, args)
        ),
    )(*args)

    # slice the real columns back out of the lane-dense slabs
    return x_rec_p[:, :D_OUT], z_p[:, :H2], logits_p[:, :N_CLASSES]


def init_params(key):
    """PyTorch-shaped params: nn.Linear default init (uniform +-1/sqrt(fan_in)),
    BatchNorm gamma=1, beta=0.  Weights stored as (in_features, out_features)."""
    def linear(key, fan_in, fan_out):
        kw, kb = jax.random.split(key)
        bound = 1.0 / math.sqrt(fan_in)
        w = jax.random.uniform(kw, (fan_in, fan_out), jnp.float32, -bound, bound)
        b = jax.random.uniform(kb, (1, fan_out), jnp.float32, -bound, bound)
        return w, b

    keys = jax.random.split(key, 5)
    w1, b1 = linear(keys[0], D_IN, H1)
    w2, b2 = linear(keys[1], H1, H2)
    w3, b3 = linear(keys[2], H2, H3)
    wp, bp = linear(keys[3], H3, D_OUT)
    wa, ba = linear(keys[4], H2, N_CLASSES)
    return dict(
        w1=w1, b1=b1, g1=jnp.ones((1, H1), jnp.float32), be1=jnp.zeros((1, H1), jnp.float32),
        w2=w2, b2=b2, g2=jnp.ones((1, H2), jnp.float32), be2=jnp.zeros((1, H2), jnp.float32),
        w3=w3, b3=b3, g3=jnp.ones((1, H3), jnp.float32), be3=jnp.zeros((1, H3), jnp.float32),
        wp=wp, bp=bp,
        wa=wa, ba=ba,
    )


def pad_params(params):
    """One-time host-side zero-padding of all hidden/output feature dims to 128
    lanes (input dim of the first layer stays 88 = 11*8, already sublane-aligned).
    Zero padding keeps padded activations exactly zero through Linear+BN+ReLU."""
    def pad2(a, rows, cols):
        r, c = a.shape
        return jnp.pad(a, ((0, rows - r), (0, cols - c)))

    return dict(
        w1=pad2(params["w1"], D_IN, LANE), b1=pad2(params["b1"], 1, LANE),
        g1=pad2(params["g1"], 1, LANE), be1=pad2(params["be1"], 1, LANE),
        w2=pad2(params["w2"], LANE, LANE), b2=pad2(params["b2"], 1, LANE),
        g2=pad2(params["g2"], 1, LANE), be2=pad2(params["be2"], 1, LANE),
        w3=pad2(params["w3"], LANE, LANE), b3=pad2(params["b3"], 1, LANE),
        g3=pad2(params["g3"], 1, LANE), be3=pad2(params["be3"], 1, LANE),
        wp=pad2(params["wp"], LANE, LANE), bp=pad2(params["bp"], 1, LANE),
        wa=pad2(params["wa"], LANE, LANE), ba=pad2(params["ba"], 1, LANE),
    )


if __name__ == "__main__":
    key = jax.random.PRNGKey(0)
    kx, kp = jax.random.split(key)

    B = 8  # batch size (training-mode BatchNorm needs batch > 1)
    x = jax.random.normal(kx, (B, D_IN), jnp.float32)
    pparams = pad_params(init_params(kp))

    fwd = jax.jit(multitask_autoencoder)
    x_rec, z, logits = fwd(x, pparams)
    jax.block_until_ready((x_rec, z, logits))

    assert x_rec.shape == (B, D_OUT)
    assert z.shape == (B, H2)
    assert logits.shape == (B, N_CLASSES)
    # softmax rows sum to 1
    assert jnp.allclose(jnp.sum(logits, axis=1), 1.0, atol=1e-4)
    # z passed through ReLU -> non-negative
    assert bool(jnp.all(z >= 0.0))

    print("KERNEL_OK")
</pallas_src>

<mosaic_0001>
module attributes {stable_mosaic.version = 11 : i64} {
  func.func @_mtae_kernel(%arg0: memref<8x88xf32, #tpu.memory_space<vmem>>, %arg1: memref<88x128xf32, #tpu.memory_space<vmem>>, %arg2: memref<1x128xf32, #tpu.memory_space<vmem>>, %arg3: memref<1x128xf32, #tpu.memory_space<vmem>>, %arg4: memref<1x128xf32, #tpu.memory_space<vmem>>, %arg5: memref<128x128xf32, #tpu.memory_space<vmem>>, %arg6: memref<1x128xf32, #tpu.memory_space<vmem>>, %arg7: memref<1x128xf32, #tpu.memory_space<vmem>>, %arg8: memref<1x128xf32, #tpu.memory_space<vmem>>, %arg9: memref<128x128xf32, #tpu.memory_space<vmem>>, %arg10: memref<1x128xf32, #tpu.memory_space<vmem>>, %arg11: memref<1x128xf32, #tpu.memory_space<vmem>>, %arg12: memref<1x128xf32, #tpu.memory_space<vmem>>, %arg13: memref<128x128xf32, #tpu.memory_space<vmem>>, %arg14: memref<1x128xf32, #tpu.memory_space<vmem>>, %arg15: memref<128x128xf32, #tpu.memory_space<vmem>>, %arg16: memref<1x128xf32, #tpu.memory_space<vmem>>, %arg17: memref<8x128xf32, #tpu.memory_space<vmem>>, %arg18: memref<8x128xf32, #tpu.memory_space<vmem>>, %arg19: memref<8x128xf32, #tpu.memory_space<vmem>>) attributes {dimension_semantics = [], scalar_prefetch = 0 : i64, scratch_operands = 0 : i64, tpu.core_type = #tpu.core_type<tc>} {
    %c0 = arith.constant 0 : index
    %c0_0 = arith.constant 0 : index
    %0 = vector.load %arg0[%c0, %c0_0] : memref<8x88xf32, #tpu.memory_space<vmem>>, vector<8x88xf32>
    %c0_1 = arith.constant 0 : index
    %c0_2 = arith.constant 0 : index
    %1 = vector.load %arg1[%c0_1, %c0_2] : memref<88x128xf32, #tpu.memory_space<vmem>>, vector<88x128xf32>
    %cst = arith.constant dense<0.000000e+00> : vector<8x128xf32>
    %2 = tpu.matmul %0, %1, %cst {dimension_numbers = #tpu.dot_dimension_numbers<[1], [0], [0], [1], [0, 0, 1, 1], [], []>} : vector<8x88xf32>, vector<88x128xf32>, vector<8x128xf32> -> vector<8x128xf32>
    %c0_3 = arith.constant 0 : index
    %c0_4 = arith.constant 0 : index
    %3 = vector.load %arg2[%c0_3, %c0_4] : memref<1x128xf32, #tpu.memory_space<vmem>>, vector<1x128xf32>
    %4 = vector.broadcast %3 : vector<1x128xf32> to vector<8x128xf32>
    %5 = arith.addf %2, %4 : vector<8x128xf32>
    %cst_5 = arith.constant dense<0.000000e+00> : vector<128xf32>
    %6 = vector.multi_reduction <add>, %5, %cst_5 [0] : vector<8x128xf32> to vector<128xf32>
    %7 = vector.shape_cast %6 : vector<128xf32> to vector<1x128xf32>
    %8 = arith.mulf %5, %5 : vector<8x128xf32>
    %cst_6 = arith.constant dense<0.000000e+00> : vector<128xf32>
    %9 = vector.multi_reduction <add>, %8, %cst_6 [0] : vector<8x128xf32> to vector<128xf32>
    %10 = vector.shape_cast %9 : vector<128xf32> to vector<1x128xf32>
    %cst_7 = arith.constant 1.250000e-01 : f32
    %11 = vector.broadcast %cst_7 : f32 to vector<1x128xf32>
    %12 = arith.mulf %7, %11 : vector<1x128xf32>
    %cst_8 = arith.constant 1.250000e-01 : f32
    %13 = vector.broadcast %cst_8 : f32 to vector<1x128xf32>
    %14 = arith.mulf %10, %13 : vector<1x128xf32>
    %15 = arith.mulf %12, %12 : vector<1x128xf32>
    %16 = arith.subf %14, %15 : vector<1x128xf32>
    %cst_9 = arith.constant 0.000000e+00 : f32
    %17 = vector.broadcast %cst_9 : f32 to vector<1x128xf32>
    %18 = arith.maximumf %16, %17 : vector<1x128xf32>
    %c0_10 = arith.constant 0 : index
    %c0_11 = arith.constant 0 : index
    %19 = vector.load %arg3[%c0_10, %c0_11] : memref<1x128xf32, #tpu.memory_space<vmem>>, vector<1x128xf32>
    %cst_12 = arith.constant 9.99999974E-6 : f32
    %20 = vector.broadcast %cst_12 : f32 to vector<1x128xf32>
    %21 = arith.addf %18, %20 : vector<1x128xf32>
    %22 = math.rsqrt %21 : vector<1x128xf32>
    %23 = arith.mulf %19, %22 : vector<1x128xf32>
    %c0_13 = arith.constant 0 : index
    %c0_14 = arith.constant 0 : index
    %24 = vector.load %arg4[%c0_13, %c0_14] : memref<1x128xf32, #tpu.memory_space<vmem>>, vector<1x128xf32>
    %25 = arith.mulf %12, %23 : vector<1x128xf32>
    %26 = arith.subf %24, %25 : vector<1x128xf32>
    %27 = vector.broadcast %23 : vector<1x128xf32> to vector<8x128xf32>
    %28 = arith.mulf %5, %27 : vector<8x128xf32>
    %29 = vector.broadcast %26 : vector<1x128xf32> to vector<8x128xf32>
    %30 = arith.addf %28, %29 : vector<8x128xf32>
    %cst_15 = arith.constant 0.000000e+00 : f32
    %31 = vector.broadcast %cst_15 : f32 to vector<8x128xf32>
    %32 = arith.maximumf %30, %31 : vector<8x128xf32>
    %c0_16 = arith.constant 0 : index
    %c0_17 = arith.constant 0 : index
    %33 = vector.load %arg5[%c0_16, %c0_17] : memref<128x128xf32, #tpu.memory_space<vmem>>, vector<128x128xf32>
    %cst_18 = arith.constant dense<0.000000e+00> : vector<8x128xf32>
    %34 = tpu.matmul %32, %33, %cst_18 {dimension_numbers = #tpu.dot_dimension_numbers<[1], [0], [0], [1], [0, 0, 1, 1], [], []>} : vector<8x128xf32>, vector<128x128xf32>, vector<8x128xf32> -> vector<8x128xf32>
    %c0_19 = arith.constant 0 : index
    %c0_20 = arith.constant 0 : index
    %35 = vector.load %arg6[%c0_19, %c0_20] : memref<1x128xf32, #tpu.memory_space<vmem>>, vector<1x128xf32>
    %36 = vector.broadcast %35 : vector<1x128xf32> to vector<8x128xf32>
    %37 = arith.addf %34, %36 : vector<8x128xf32>
    %cst_21 = arith.constant dense<0.000000e+00> : vector<128xf32>
    %38 = vector.multi_reduction <add>, %37, %cst_21 [0] : vector<8x128xf32> to vector<128xf32>
    %39 = vector.shape_cast %38 : vector<128xf32> to vector<1x128xf32>
    %40 = arith.mulf %37, %37 : vector<8x128xf32>
    %cst_22 = arith.constant dense<0.000000e+00> : vector<128xf32>
    %41 = vector.multi_reduction <add>, %40, %cst_22 [0] : vector<8x128xf32> to vector<128xf32>
    %42 = vector.shape_cast %41 : vector<128xf32> to vector<1x128xf32>
    %cst_23 = arith.constant 1.250000e-01 : f32
    %43 = vector.broadcast %cst_23 : f32 to vector<1x128xf32>
    %44 = arith.mulf %39, %43 : vector<1x128xf32>
    %cst_24 = arith.constant 1.250000e-01 : f32
    %45 = vector.broadcast %cst_24 : f32 to vector<1x128xf32>
    %46 = arith.mulf %42, %45 : vector<1x128xf32>
    %47 = arith.mulf %44, %44 : vector<1x128xf32>
    %48 = arith.subf %46, %47 : vector<1x128xf32>
    %cst_25 = arith.constant 0.000000e+00 : f32
    %49 = vector.broadcast %cst_25 : f32 to vector<1x128xf32>
    %50 = arith.maximumf %48, %49 : vector<1x128xf32>
    %c0_26 = arith.constant 0 : index
    %c0_27 = arith.constant 0 : index
    %51 = vector.load %arg7[%c0_26, %c0_27] : memref<1x128xf32, #tpu.memory_space<vmem>>, vector<1x128xf32>
    %cst_28 = arith.constant 9.99999974E-6 : f32
    %52 = vector.broadcast %cst_28 : f32 to vector<1x128xf32>
    %53 = arith.addf %50, %52 : vector<1x128xf32>
    %54 = math.rsqrt %53 : vector<1x128xf32>
    %55 = arith.mulf %51, %54 : vector<1x128xf32>
    %c0_29 = arith.constant 0 : index
    %c0_30 = arith.constant 0 : index
    %56 = vector.load %arg8[%c0_29, %c0_30] : memref<1x128xf32, #tpu.memory_space<vmem>>, vector<1x128xf32>
    %57 = arith.mulf %44, %55 : vector<1x128xf32>
    %58 = arith.subf %56, %57 : vector<1x128xf32>
    %59 = vector.broadcast %55 : vector<1x128xf32> to vector<8x128xf32>
    %60 = arith.mulf %37, %59 : vector<8x128xf32>
    %61 = vector.broadcast %58 : vector<1x128xf32> to vector<8x128xf32>
    %62 = arith.addf %60, %61 : vector<8x128xf32>
    %cst_31 = arith.constant 0.000000e+00 : f32
    %63 = vector.broadcast %cst_31 : f32 to vector<8x128xf32>
    %64 = arith.maximumf %62, %63 : vector<8x128xf32>
    %c0_32 = arith.constant 0 : index
    %c0_33 = arith.constant 0 : index
    %65 = vector.load %arg9[%c0_32, %c0_33] : memref<128x128xf32, #tpu.memory_space<vmem>>, vector<128x128xf32>
    %cst_34 = arith.constant dense<0.000000e+00> : vector<8x128xf32>
    %66 = tpu.matmul %64, %65, %cst_34 {dimension_numbers = #tpu.dot_dimension_numbers<[1], [0], [0], [1], [0, 0, 1, 1], [], []>} : vector<8x128xf32>, vector<128x128xf32>, vector<8x128xf32> -> vector<8x128xf32>
    %c0_35 = arith.constant 0 : index
    %c0_36 = arith.constant 0 : index
    %67 = vector.load %arg10[%c0_35, %c0_36] : memref<1x128xf32, #tpu.memory_space<vmem>>, vector<1x128xf32>
    %68 = vector.broadcast %67 : vector<1x128xf32> to vector<8x128xf32>
    %69 = arith.addf %66, %68 : vector<8x128xf32>
    %cst_37 = arith.constant dense<0.000000e+00> : vector<128xf32>
    %70 = vector.multi_reduction <add>, %69, %cst_37 [0] : vector<8x128xf32> to vector<128xf32>
    %71 = vector.shape_cast %70 : vector<128xf32> to vector<1x128xf32>
    %72 = arith.mulf %69, %69 : vector<8x128xf32>
    %cst_38 = arith.constant dense<0.000000e+00> : vector<128xf32>
    %73 = vector.multi_reduction <add>, %72, %cst_38 [0] : vector<8x128xf32> to vector<128xf32>
    %74 = vector.shape_cast %73 : vector<128xf32> to vector<1x128xf32>
    %cst_39 = arith.constant 1.250000e-01 : f32
    %75 = vector.broadcast %cst_39 : f32 to vector<1x128xf32>
    %76 = arith.mulf %71, %75 : vector<1x128xf32>
    %cst_40 = arith.constant 1.250000e-01 : f32
    %77 = vector.broadcast %cst_40 : f32 to vector<1x128xf32>
    %78 = arith.mulf %74, %77 : vector<1x128xf32>
    %79 = arith.mulf %76, %76 : vector<1x128xf32>
    %80 = arith.subf %78, %79 : vector<1x128xf32>
    %cst_41 = arith.constant 0.000000e+00 : f32
    %81 = vector.broadcast %cst_41 : f32 to vector<1x128xf32>
    %82 = arith.maximumf %80, %81 : vector<1x128xf32>
    %c0_42 = arith.constant 0 : index
    %c0_43 = arith.constant 0 : index
    %83 = vector.load %arg11[%c0_42, %c0_43] : memref<1x128xf32, #tpu.memory_space<vmem>>, vector<1x128xf32>
    %cst_44 = arith.constant 9.99999974E-6 : f32
    %84 = vector.broadcast %cst_44 : f32 to vector<1x128xf32>
    %85 = arith.addf %82, %84 : vector<1x128xf32>
    %86 = math.rsqrt %85 : vector<1x128xf32>
    %87 = arith.mulf %83, %86 : vector<1x128xf32>
    %c0_45 = arith.constant 0 : index
    %c0_46 = arith.constant 0 : index
    %88 = vector.load %arg12[%c0_45, %c0_46] : memref<1x128xf32, #tpu.memory_space<vmem>>, vector<1x128xf32>
    %89 = arith.mulf %76, %87 : vector<1x128xf32>
    %90 = arith.subf %88, %89 : vector<1x128xf32>
    %91 = vector.broadcast %87 : vector<1x128xf32> to vector<8x128xf32>
    %92 = arith.mulf %69, %91 : vector<8x128xf32>
    %93 = vector.broadcast %90 : vector<1x128xf32> to vector<8x128xf32>
    %94 = arith.addf %92, %93 : vector<8x128xf32>
    %cst_47 = arith.constant 0.000000e+00 : f32
    %95 = vector.broadcast %cst_47 : f32 to vector<8x128xf32>
    %96 = arith.maximumf %94, %95 : vector<8x128xf32>
    %c0_48 = arith.constant 0 : index
    %c0_49 = arith.constant 0 : index
    %97 = vector.load %arg13[%c0_48, %c0_49] : memref<128x128xf32, #tpu.memory_space<vmem>>, vector<128x128xf32>
    %cst_50 = arith.constant dense<0.000000e+00> : vector<8x128xf32>
    %98 = tpu.matmul %96, %97, %cst_50 {dimension_numbers = #tpu.dot_dimension_numbers<[1], [0], [0], [1], [0, 0, 1, 1], [], []>} : vector<8x128xf32>, vector<128x128xf32>, vector<8x128xf32> -> vector<8x128xf32>
    %c0_51 = arith.constant 0 : index
    %c0_52 = arith.constant 0 : index
    %99 = vector.load %arg14[%c0_51, %c0_52] : memref<1x128xf32, #tpu.memory_space<vmem>>, vector<1x128xf32>
    %100 = vector.broadcast %99 : vector<1x128xf32> to vector<8x128xf32>
    %101 = arith.addf %98, %100 : vector<8x128xf32>
    %c0_53 = arith.constant 0 : index
    %c0_54 = arith.constant 0 : index
    %102 = vector.load %arg15[%c0_53, %c0_54] : memref<128x128xf32, #tpu.memory_space<vmem>>, vector<128x128xf32>
    %cst_55 = arith.constant dense<0.000000e+00> : vector<8x128xf32>
    %103 = tpu.matmul %64, %102, %cst_55 {dimension_numbers = #tpu.dot_dimension_numbers<[1], [0], [0], [1], [0, 0, 1, 1], [], []>} : vector<8x128xf32>, vector<128x128xf32>, vector<8x128xf32> -> vector<8x128xf32>
    %c0_56 = arith.constant 0 : index
    %c0_57 = arith.constant 0 : index
    %104 = vector.load %arg16[%c0_56, %c0_57] : memref<1x128xf32, #tpu.memory_space<vmem>>, vector<1x128xf32>
    %105 = vector.broadcast %104 : vector<1x128xf32> to vector<8x128xf32>
    %106 = arith.addf %103, %105 : vector<8x128xf32>
    %107 = tpu.iota {dimensions = array<i32: 1>} : vector<8x128xi32>
    %c2_i32 = arith.constant 2 : i32
    %108 = vector.broadcast %c2_i32 : i32 to vector<8x128xi32>
    %109 = arith.cmpi slt, %107, %108 : vector<8x128xi32>
    %cst_58 = arith.constant -1.000000e+30 : f32
    %110 = vector.broadcast %cst_58 : f32 to vector<8x128xf32>
    %111 = arith.select %109, %106, %110 : vector<8x128xi1>, vector<8x128xf32>
    %cst_59 = arith.constant dense<0xFF800000> : vector<8xf32>
    %112 = vector.multi_reduction <maximumf>, %111, %cst_59 [1] : vector<8x128xf32> to vector<8xf32>
    %113 = vector.shape_cast %112 : vector<8xf32> to vector<8x1xf32>
    %114 = vector.broadcast %113 : vector<8x1xf32> to vector<8x128xf32>
    %115 = arith.subf %111, %114 : vector<8x128xf32>
    %116 = math.exp %115 : vector<8x128xf32>
    %cst_60 = arith.constant dense<0.000000e+00> : vector<8xf32>
    %117 = vector.multi_reduction <add>, %116, %cst_60 [1] : vector<8x128xf32> to vector<8xf32>
    %118 = vector.shape_cast %117 : vector<8xf32> to vector<8x1xf32>
    %119 = tpu.reciprocal %118 {approx = true} : vector<8x1xf32> -> vector<8x1xf32>
    %120 = arith.mulf %118, %119 : vector<8x1xf32>
    %cst_61 = arith.constant 2.000000e+00 : f32
    %121 = vector.broadcast %cst_61 : f32 to vector<8x1xf32>
    %122 = arith.subf %121, %120 : vector<8x1xf32>
    %123 = arith.mulf %119, %122 : vector<8x1xf32>
    %124 = vector.broadcast %123 : vector<8x1xf32> to vector<8x128xf32>
    %125 = arith.mulf %116, %124 : vector<8x128xf32>
    %c0_62 = arith.constant 0 : index
    %c0_63 = arith.constant 0 : index
    %126 = vector.load %arg17[%c0_62, %c0_63] : memref<8x128xf32, #tpu.memory_space<vmem>>, vector<8x128xf32>
    tpu.vector_store %arg17[%c0_62, %c0_63], %101 {strides = array<i32>} : memref<8x128xf32, #tpu.memory_space<vmem>>, vector<8x128xf32>,
    %c0_64 = arith.constant 0 : index
    %c0_65 = arith.constant 0 : index
    %127 = vector.load %arg18[%c0_64, %c0_65] : memref<8x128xf32, #tpu.memory_space<vmem>>, vector<8x128xf32>
    tpu.vector_store %arg18[%c0_64, %c0_65], %64 {strides = array<i32>} : memref<8x128xf32, #tpu.memory_space<vmem>>, vector<8x128xf32>,
    %c0_66 = arith.constant 0 : index
    %c0_67 = arith.constant 0 : index
    %128 = vector.load %arg19[%c0_66, %c0_67] : memref<8x128xf32, #tpu.memory_space<vmem>>, vector<8x128xf32>
    tpu.vector_store %arg19[%c0_66, %c0_67], %125 {strides = array<i32>} : memref<8x128xf32, #tpu.memory_space<vmem>>, vector<8x128xf32>,
    return
  }
}

</mosaic_0001>

<bundles_post_ra>
// kernel: multitask_autoencoder.1
= control target key start
LH: loop header
LB: loop body
LE: loop exit
PB: predicated region body
PF: predicated region fallthrough
CT: control target
= control target key end

     0   :  { %s1611_s0 = inlined_call_operand.hbm [shape: f32[8,88], index: 0, kind: input, shape index: {}]   ;;  %s1612_s1 = inlined_call_operand.hbm [shape: f32[88,128], index: 1, kind: input, shape index: {}]   ;;  %s1613_s2 = inlined_call_operand.vmem [shape: f32[1,128], index: 2, kind: input, shape index: {}]   ;;  %s1614_s3 = inlined_call_operand.vmem [shape: f32[1,128], index: 3, kind: input, shape index: {}]   ;;  %s1615_s4 = inlined_call_operand.vmem [shape: f32[1,128], index: 4, kind: input, shape index: {}]   ;;  %s1616_s5 = inlined_call_operand.hbm [shape: f32[128,128], index: 5, kind: input, shape index: {}]   ;;  %s1617_s6 = inlined_call_operand.hbm [shape: f32[1,128], index: 6, kind: input, shape index: {}]   ;;  %s1618_s7 = inlined_call_operand.vmem [shape: f32[1,128], index: 7, kind: input, shape index: {}]   ;;  %s1619_s8 = inlined_call_operand.vmem [shape: f32[1,128], index: 8, kind: input, shape index: {}]   ;;  %s1620_s9 = inlined_call_operand.hbm [shape: f32[128,128], index: 9, kind: input, shape index: {}]   ;;  %s1621_s10 = inlined_call_operand.hbm [shape: f32[1,128], index: 10, kind: input, shape index: {}]   ;;  %s1622_s11 = inlined_call_operand.vmem [shape: f32[1,128], index: 11, kind: input, shape index: {}]   ;;  %s1623_s12 = inlined_call_operand.vmem [shape: f32[1,128], index: 12, kind: input, shape index: {}]   ;;  %s1624_s13 = inlined_call_operand.hbm [shape: f32[128,128], index: 13, kind: input, shape index: {}]   ;;  %s1625_s14 = inlined_call_operand.vmem [shape: f32[1,128], index: 14, kind: input, shape index: {}]   ;;  %s1626_s15 = inlined_call_operand.hbm [shape: f32[128,128], index: 15, kind: input, shape index: {}]   ;;  %s1627_s16 = inlined_call_operand.hbm [shape: f32[1,128], index: 16, kind: input, shape index: {}]   ;;  %s1628_s17 = inlined_call_operand.hbm [shape: f32[8,128], index: 17, kind: output, shape index: {0}]   ;;  %s1629_s18 = inlined_call_operand.hbm [shape: f32[8,128], index: 18, kind: output, shape index: {1}]   ;;  %s1630_s19 = inlined_call_operand.vmem [shape: f32[8,128], index: 19, kind: output, shape index: {2}]  }
   0x1   :  { %1631 = sst [smem:[#allocation27_spill]] %s1611_s0 }
   0x2   :  { %1632 = sst [smem:[#allocation28_spill]] %s1612_s1 }
   0x3   :  { %1633 = sst [smem:[#allocation29_spill]] %s1613_s2 }
   0x4   :  { %1634 = sst [smem:[#allocation30_spill]] %s1614_s3 }
   0x5   :  { %25 = vsyncpa [#allocation3], 0 }
   0x6   :  { %26 = vsyncpa [#allocation6], 0 }
   0x7   :  { %27 = vsyncpa [#allocation9], 0 }
   0x8   :  { %28 = vsyncpa [#allocation12], 0 }
   0x9   :  { %29 = vsyncpa [#allocation15], 0 }
   0xa   :  { %30 = vsyncpa [#allocation4], 0 }
   0xb   :  { %31 = vsyncpa [#allocation19], 0  ;;  %s1326_s0 = smov [#allocation5]  }
   0xc   :  { %s47_s30 = sshll.u32 %s1326_s0, 4  ;;  %s48_s30 = int_to_ptr.vmem [resolvable:$true] %s47_s30 }
   0xd   :  { %s1100_s20 = scalar_lea.vmem %s48_s30, 1408  ;;  %p1105_p1 = scmp.lt.s32.totalorder %s48_s30, %s48_s30 }
   0xe   :  { %p1101_p0 = scmp.ne.s32.totalorder %s48_s30, %s1100_s20  ;;  %p1106_p2 = scmp.lt.s32.totalorder %s1100_s20, %s1100_s20 }
  0x10   :  { %p1107_p3 = por %p1106_p2, %p1105_p1 }
  0x12   :  { %p1108_p4 = pnand %p1107_p3, %p1101_p0 }
  0x14   :  { %1111 = shalt.err (!%p1108_p4)
}
  0x15   :  { %s1327_s21 = smov 128   ;;  %s1328_s1 = smov 8  }
  0x16   :  { %s1635_s23 = sld [smem:[#allocation28_spill]]  ;;  %s1329_s24 = smov [#allocation8]  }
  0x17   :  { %s78_s25 = sshll.u32 %s1329_s24, 4  ;;  %s1330_s3 = smov [#allocation11]   ;;  %s79_s25 = int_to_ptr.vmem [resolvable:$true] %s78_s25 }
  0x18   :  { %s104_s26 = sshll.u32 %s1330_s3, 4  ;;  %s1120_s27 = scalar_lea.vmem %s79_s25, 16  ;;  %s105_s26 = int_to_ptr.vmem [resolvable:$true] %s104_s26 }
  0x19   :  { %p1121_p5 = scmp.ne.s32.totalorder %s79_s25, %s1120_s27  ;;  %s1124_s28 = scalar_lea.vmem %s79_s25, 32 }
  0x1a   :  { %p1125_p6 = scmp.lt.s32.totalorder %s79_s25, %s79_s25  ;;  %p1126_p7 = scmp.lt.s32.totalorder %s1124_s28, %s1120_s27 }
  0x1c   :  { %53 = dma.hbm_to_vmem [thread:$0]  %s1635_s23, 1408, %s48_s30, [#allocation6], %s1327_s21, %s1327_s21, %s1328_s1  }
  0x1d   :  { %p1127_p8 = por %p1126_p7, %p1125_p6 }
  0x1f   :  { %p1128_p9 = pnand %p1127_p8, %p1121_p5 }
  0x21   :  { %1131 = shalt.err (!%p1128_p9)
}
  0x22   :  { %81 = dma.hbm_to_vmem [thread:$0]  %s1617_s6, 16, %s79_s25, [#allocation9]  }
  0x23   :  { %s1140_s20 = scalar_lea.vmem %s105_s26, 16  ;;  %s1144_s30 = scalar_lea.vmem %s105_s26, 32 }
  0x24   :  { %p1141_p10 = scmp.ne.s32.totalorder %s105_s26, %s1140_s20  ;;  %p1145_p11 = scmp.lt.s32.totalorder %s105_s26, %s105_s26 }
  0x25   :  { %p1146_p12 = scmp.lt.s32.totalorder %s1144_s30, %s1140_s20 }
  0x27   :  { %p1147_p13 = por %p1146_p12, %p1145_p11 }
  0x29   :  { %p1148_p0 = pnand %p1147_p13, %p1141_p10 }
  0x2b   :  { %1151 = shalt.err (!%p1148_p0)
}
  0x2c   :  { %107 = dma.hbm_to_vmem [thread:$0]  %s1621_s10, 16, %s105_s26, [#allocation12]  }
  0x2d   :  { %s1331_s23 = smov [#allocation14]   ;;  %s1332_s3 = smov [#allocation2]  }
  0x2e   :  { %s131_s24 = sshll.u32 %s1331_s23, 4  ;;  %s38_s27 = sshll.u32 %s1332_s3, 4  ;;  %s132_s24 = int_to_ptr.vmem [resolvable:$true] %s131_s24  ;;  %s39_s27 = int_to_ptr.vmem [resolvable:$true] %s38_s27 }
  0x2f   :  { %s1160_s28 = scalar_lea.vmem %s132_s24, 2048  ;;  %p1165_p2 = scmp.lt.s32.totalorder %s132_s24, %s132_s24 }
  0x30   :  { %p1161_p1 = scmp.ne.s32.totalorder %s132_s24, %s1160_s28  ;;  %p1166_p3 = scmp.lt.s32.totalorder %s1160_s28, %s1160_s28 }
  0x32   :  { %p1167_p4 = por %p1166_p3, %p1165_p2 }
  0x34   :  { %p1168_p5 = pnand %p1167_p4, %p1161_p1 }
  0x36   :  { %1171 = shalt.err (!%p1168_p5)
}
  0x37   :  { %137 = dma.hbm_to_vmem [thread:$0]  %s1626_s15, 2048, %s132_s24, [#allocation15], %s1327_s21, %s1327_s21, %s1328_s1  }
  0x38   :  { %s1180_s10 = scalar_lea.vmem %s39_s27, 128  ;;  %p1185_p7 = scmp.lt.s32.totalorder %s39_s27, %s39_s27 }
  0x39   :  { %p1181_p6 = scmp.ne.s32.totalorder %s39_s27, %s1180_s10  ;;  %p1186_p8 = scmp.lt.s32.totalorder %s1180_s10, %s1180_s10 }
  0x3b   :  { %p1187_p9 = por %p1186_p8, %p1185_p7 }
  0x3d   :  { %p1188_p10 = pnand %p1187_p9, %p1181_p6 }
  0x3f   :  { %1191 = shalt.err (!%p1188_p10)
}
  0x40   :  { %s1636_s0 = sld [smem:[#allocation27_spill]]  ;;  %s1333_s20 = smov [#allocation7]  }
  0x41   :  { %s65_s30 = sshll.u32 %s1333_s20, 4  ;;  %s1334_s22 = smov [#allocation10]   ;;  %s66_s30 = int_to_ptr.vmem [resolvable:$true] %s65_s30 }
  0x42   :  { %s91_s2 = sshll.u32 %s1334_s22, 4  ;;  %s1200_s23 = scalar_lea.vmem %s66_s30, 2048  ;;  %s92_s2 = int_to_ptr.vmem [resolvable:$true] %s91_s2 }
  0x43   :  { %p1201_p11 = scmp.ne.s32.totalorder %s66_s30, %s1200_s23  ;;  %p1205_p12 = scmp.lt.s32.totalorder %s66_s30, %s66_s30 }
  0x44   :  { %p1206_p13 = scmp.lt.s32.totalorder %s1200_s23, %s1200_s23 }
  0x46   :  { %41 = dma.hbm_to_vmem [thread:$0]  %s1636_s0, 128, %s39_s27, [#allocation3]  }
  0x47   :  { %p1207_p0 = por %p1206_p13, %p1205_p12 }
  0x49   :  { %p1208_p1 = pnand %p1207_p0, %p1201_p11 }
  0x4b   :  { %1211 = shalt.err (!%p1208_p1)
}
  0x4c   :  { %71 = dma.hbm_to_vmem [thread:$0]  %s1616_s5, 2048, %s66_s30, [#allocation6], %s1327_s21, %s1327_s21, %s1328_s1  }
  0x4d   :  { %s1220_s3 = scalar_lea.vmem %s92_s2, 2048  ;;  %p1225_p3 = scmp.lt.s32.totalorder %s92_s2, %s92_s2 }
  0x4e   :  { %p1221_p2 = scmp.ne.s32.totalorder %s92_s2, %s1220_s3  ;;  %p1226_p4 = scmp.lt.s32.totalorder %s1220_s3, %s1220_s3 }
  0x50   :  { %p1227_p5 = por %p1226_p4, %p1225_p3 }
  0x52   :  { %p1228_p6 = pnand %p1227_p5, %p1221_p2 }
  0x54   :  { %1231 = shalt.err (!%p1228_p6)
}
  0x55   :  { %97 = dma.hbm_to_vmem [thread:$0]  %s1620_s9, 2048, %s92_s2, [#allocation9], %s1327_s21, %s1327_s21, %s1328_s1  }
  0x56   :  { %s1335_s6 = smov [#allocation13]   ;;  %s1336_s10 = smov [#allocation16]  }
  0x57   :  { %s117_s25 = sshll.u32 %s1335_s6, 4  ;;  %s144_s5 = sshll.u32 %s1336_s10, 4  ;;  %s118_s25 = int_to_ptr.vmem [resolvable:$true] %s117_s25  ;;  %s145_s5 = int_to_ptr.vmem [resolvable:$true] %s144_s5 }
  0x58   :  { %s1240_s26 = scalar_lea.vmem %s118_s25, 2048  ;;  %p1245_p8 = scmp.lt.s32.totalorder %s118_s25, %s118_s25 }
  0x59   :  { %p1241_p7 = scmp.ne.s32.totalorder %s118_s25, %s1240_s26  ;;  %p1246_p9 = scmp.lt.s32.totalorder %s1240_s26, %s1240_s26 }
  0x5b   :  { %p1247_p10 = por %p1246_p9, %p1245_p8 }
  0x5d   :  { %p1248_p11 = pnand %p1247_p10, %p1241_p7 }
  0x5f   :  { %1251 = shalt.err (!%p1248_p11)
}
  0x60   :  { %123 = dma.hbm_to_vmem [thread:$0]  %s1624_s13, 2048, %s118_s25, [#allocation12], %s1327_s21, %s1327_s21, %s1328_s1  }
  0x61   :  { %s1260_s9 = scalar_lea.vmem %s145_s5, 16  ;;  %s1264_s20 = scalar_lea.vmem %s145_s5, 32 }
  0x62   :  { %p1261_p12 = scmp.ne.s32.totalorder %s145_s5, %s1260_s9  ;;  %p1265_p13 = scmp.lt.s32.totalorder %s145_s5, %s145_s5 }
  0x63   :  { %p1266_p0 = scmp.lt.s32.totalorder %s1264_s20, %s1260_s9 }
  0x65   :  { %p1267_p1 = por %p1266_p0, %p1265_p13 }
  0x67   :  { %p1268_p2 = pnand %p1267_p1, %p1261_p12 }
  0x69   :  { %1271 = shalt.err (!%p1268_p2)
}
  0x6a   :  { %147 = dma.hbm_to_vmem [thread:$0]  %s1627_s16, 16, %s145_s5, [#allocation15]  }
  0x6b   :  { %1312 = dma.done.wait [#allocation3], 128  }
  0x6c   :  { %1313 = vsyncadd [#allocation3], 4294967168 }
  0x6d   :  { %1314 = dma.done.wait [#allocation6], 3456  }
  0x6e   :  { %1315 = vsyncadd [#allocation6], 4294963840 }
  0x6f   :  { %1316 = dma.done.wait [#allocation9], 2064  }
  0x70   :  { %1317 = vsyncadd [#allocation9], 4294965232 }
  0x71   :  { %1318 = dma.done.wait [#allocation12], 2064  }
  0x72   :  { %1319 = vsyncadd [#allocation12], 4294965232 }
  0x73   :  { %1320 = dma.done.wait [#allocation15], 2064  }
  0x74   :  { %1321 = vsyncadd [#allocation15], 4294965232  ;;  %v1337_v0 = vmov 0.0   ;;  %vm1338_vm0 = vmmov 0   ;;  %v186_v1 = vld [vmem:[#allocation5 + $0x50] sm:$0xff]  ;;  %v185_v2 = vld [vmem:[#allocation5 + $0x48] sm:$0xff]  ;;  %v294_v52 = vlaneseq }
  0x75   :  { %902 = vmatprep.subr.mxu0 %v1337_v0  ;;  %924 = vmatprep.mubr.msk.f32.mxu0 %vm1338_vm0, %v1337_v0  ;;  %v184_v3 = vld [vmem:[#allocation5 + $0x40] sm:$0xff]  ;;  %v183_v4 = vld [vmem:[#allocation5 + $0x38] sm:$0xff]  ;;  %v182_v5 = vld [vmem:[#allocation5 + $0x30] sm:$0xff]  ;;  %vm194_vm1 = vcmask 719872   ;;  %s1637_s21 = sld [smem:[#allocation29_spill]] }
  0x76   :  { %927 = vmatprep.subr.mxu1 %v1337_v0  ;;  %959 = vmatprep.mubr.msk.f32.mxu1 %vm1338_vm0, %v1337_v0  ;;  %v181_v6 = vld [vmem:[#allocation5 + $0x28] sm:$0xff]  ;;  %v180_v7 = vld [vmem:[#allocation5 + $0x20] sm:$0xff]  ;;  %v179_v8 = vld [vmem:[#allocation5 + $0x18] sm:$0xff]  ;;  %v295_v53 = vshrl.u32 %v294_v52, 7  ;;  %s1638_s23 = sld [smem:[#allocation30_spill]] }
  0x77   :  { %903 = vmatpush3.msra.mxu0 %v186_v1  ;;  %v178_v9 = vld [vmem:[#allocation5 + $0x10] sm:$0xff]  ;;  %v177_v10 = vld [vmem:[#allocation5 + $0x8] sm:$0xff]  ;;  %v176_v11 = vld [vmem:[#allocation5] sm:$0xff] }
  0x78   :  { %904 = vmatprep.subr.mxu0 %v1337_v0  ;;  %v175_v12 = vld [vmem:[#allocation2] sm:$0xff]  ;;  %v323_v13 = vld [vmem:[#allocation7 + $0x78] sm:$0xff]  ;;  %v322_v14 = vld [vmem:[#allocation7 + $0x70] sm:$0xff]  ;;  %v1525_v55 = vsub.s32 0, %v295_v53 }
  0x79   :  { %905 = vmatpush3.msra.mxu0 %v185_v2  ;;  %928 = vmatpush3.msra.mxu1 %v323_v13  ;;  %v321_v15 = vld [vmem:[#allocation7 + $0x68] sm:$0xff]  ;;  %v320_v16 = vld [vmem:[#allocation7 + $0x60] sm:$0xff]  ;;  %v319_v17 = vld [vmem:[#allocation7 + $0x58] sm:$0xff] }
  0x7a   :  { %906 = vmatprep.subr.mxu0 %v1337_v0  ;;  %929 = vmatprep.subr.mxu1 %v1337_v0  ;;  %v318_v18 = vld [vmem:[#allocation7 + $0x50] sm:$0xff]  ;;  %v317_v19 = vld [vmem:[#allocation7 + $0x48] sm:$0xff]  ;;  %v316_v20 = vld [vmem:[#allocation7 + $0x40] sm:$0xff] }
  0x7b   :  { %907 = vmatpush3.msra.mxu0 %v184_v3  ;;  %930 = vmatpush3.msra.mxu1 %v322_v14  ;;  %v315_v21 = vld [vmem:[#allocation7 + $0x38] sm:$0xff]  ;;  %v314_v22 = vld [vmem:[#allocation7 + $0x30] sm:$0xff]  ;;  %v313_v23 = vld [vmem:[#allocation7 + $0x28] sm:$0xff] }
  0x7c   :  { %908 = vmatprep.subr.mxu0 %v1337_v0  ;;  %931 = vmatprep.subr.mxu1 %v1337_v0  ;;  %v312_v24 = vld [vmem:[#allocation7 + $0x20] sm:$0xff]  ;;  %v311_v25 = vld [vmem:[#allocation7 + $0x18] sm:$0xff]  ;;  %v310_v26 = vld [vmem:[#allocation7 + $0x10] sm:$0xff] }
  0x7d   :  { %909 = vmatpush3.msra.mxu0 %v183_v4  ;;  %932 = vmatpush3.msra.mxu1 %v321_v15  ;;  %v309_v27 = vld [vmem:[#allocation7 + $0x8] sm:$0xff]  ;;  %v308_v28 = vld [vmem:[#allocation7] sm:$0xff]  ;;  %v455_v4 = vld [vmem:[#allocation10 + $0x70] sm:$0xff] }
  0x7e   :  { %910 = vmatprep.subr.mxu0 %v1337_v0  ;;  %933 = vmatprep.subr.mxu1 %v1337_v0  ;;  %v816_v29 = vld [vmem:[%s1637_s21] ss:$0 sm:$0xff]  ;;  %v446_v13 = vld [vmem:[#allocation10 + $0x28] sm:$0xff]  ;;  %v445_v14 = vld [vmem:[#allocation10 + $0x20] sm:$0xff] }
  0x7f   :  { %911 = vmatpush3.msra.mxu0 %v182_v5  ;;  %934 = vmatpush3.msra.mxu1 %v320_v16  ;;  %v286_v54 = vld [vmem:[%s1638_s23] sm:$0x1]  ;;  %v454_v5 = vld [vmem:[#allocation10 + $0x68] sm:$0xff]  ;;  %v443_v16 = vld [vmem:[#allocation10 + $0x10] sm:$0xff] }
  0x80   :  { %912 = vmatprep.subr.mxu0 %v1337_v0  ;;  %935 = vmatprep.subr.mxu1 %v1337_v0  ;;  %v290_v58 = vld [vmem:[%s1615_s4] sm:$0x1] }
  0x81   :  { %913 = vmatpush3.msra.mxu0 %v181_v6  ;;  %936 = vmatpush3.msra.mxu1 %v319_v17  ;;  %v456_v3 = vld [vmem:[#allocation10 + $0x78] sm:$0xff]  ;;  %v453_v6 = vld [vmem:[#allocation10 + $0x60] sm:$0xff]  ;;  %v442_v17 = vld [vmem:[#allocation10 + $0x8] sm:$0xff] }
  0x82   :  { %914 = vmatprep.subr.mxu0 %v1337_v0  ;;  %937 = vmatprep.subr.mxu1 %v1337_v0  ;;  %v444_v15 = vld [vmem:[#allocation10 + $0x18] sm:$0xff] }
  0x83   :  { %915 = vmatpush3.msra.mxu0 %v180_v7  ;;  %938 = vmatpush3.msra.mxu1 %v318_v18  ;;  %v452_v7 = vld [vmem:[#allocation10 + $0x58] sm:$0xff]  ;;  %v441_v18 = vld [vmem:[#allocation10] sm:$0xff] }
  0x84   :  { %916 = vmatprep.subr.mxu0 %v1337_v0  ;;  %939 = vmatprep.subr.mxu1 %v1337_v0 }
  0x85   :  { %917 = vmatpush3.msra.mxu0 %v179_v8  ;;  %940 = vmatpush3.msra.mxu1 %v317_v19  ;;  %v451_v8 = vld [vmem:[#allocation10 + $0x50] sm:$0xff]  ;;  %v818_v19 = vld [vmem:[#allocation8] ss:$0 sm:$0xff] }
  0x86   :  { %918 = vmatprep.subr.mxu0 %v1337_v0  ;;  %941 = vmatprep.subr.mxu1 %v1337_v0 }
  0x87   :  { %919 = vmatpush3.msra.mxu0 %v178_v9  ;;  %942 = vmatpush3.msra.mxu1 %v316_v20  ;;  %v450_v9 = vld [vmem:[#allocation10 + $0x48] sm:$0xff] }
  0x88   :  { %920 = vmatprep.subr.mxu0 %v1337_v0  ;;  %943 = vmatprep.subr.mxu1 %v1337_v0 }
  0x89   :  { %921 = vmatpush3.msra.mxu0 %v177_v10  ;;  %944 = vmatpush3.msra.mxu1 %v315_v21  ;;  %v449_v10 = vld [vmem:[#allocation10 + $0x40] sm:$0xff] }
  0x8a   :  { %922 = vmatprep.subr.mxu0 %v1337_v0  ;;  %945 = vmatprep.subr.mxu1 %v1337_v0 }
  0x8b   :  { %923 = vmatpush3.msra.mxu0 %v176_v11  ;;  %946 = vmatpush3.msra.mxu1 %v314_v22  ;;  %v448_v11 = vld [vmem:[#allocation10 + $0x38] sm:$0xff] }
  0x8c   :  { %925 = vmatmul.mubr.msk.f32.vlgmr.msra.gmra.mxu0 %vm194_vm1, %v175_v12  ;;  %962 = vmatprep.subr.mxu0 %v1337_v0  ;;  %v447_v12 = vld [vmem:[#allocation10 + $0x30] sm:$0xff] }
  0x8d   :  { %994 = vmatprep.mubr.msk.f32.mxu0 %vm1338_vm0, %v1337_v0  ;;  %947 = vmatprep.subr.mxu1 %v1337_v0 }
  0x8e   :  { %948 = vmatpush3.msra.mxu1 %v313_v23  ;;  %963 = vmatpush3.msra.mxu0 %v456_v3  ;;  %v671_v3 = vld [vmem:[#allocation14 + $0x20] sm:$0xff] }
  0x8f   :  { %949 = vmatprep.subr.mxu1 %v1337_v0  ;;  %964 = vmatprep.subr.mxu0 %v1337_v0 }
  0x90   :  { %950 = vmatpush3.msra.mxu1 %v312_v24  ;;  %965 = vmatpush3.msra.mxu0 %v455_v4  ;;  %v670_v4 = vld [vmem:[#allocation14 + $0x18] sm:$0xff] }
  0x91   :  { %951 = vmatprep.subr.mxu1 %v1337_v0  ;;  %966 = vmatprep.subr.mxu0 %v1337_v0 }
  0x92   :  { %952 = vmatpush3.msra.mxu1 %v311_v25  ;;  %967 = vmatpush3.msra.mxu0 %v454_v5  ;;  %v669_v5 = vld [vmem:[#allocation14 + $0x10] sm:$0xff] }
  0x93   :  { %953 = vmatprep.subr.mxu1 %v1337_v0  ;;  %968 = vmatprep.subr.mxu0 %v1337_v0 }
  0x94   :  { %954 = vmatpush3.msra.mxu1 %v310_v26  ;;  %969 = vmatpush3.msra.mxu0 %v453_v6  ;;  %v668_v6 = vld [vmem:[#allocation14 + $0x8] sm:$0xff] }
  0x95   :  { %955 = vmatprep.subr.mxu1 %v1337_v0  ;;  %970 = vmatprep.subr.mxu0 %v1337_v0 }
  0x96   :  { %956 = vmatpush3.msra.mxu1 %v309_v27  ;;  %971 = vmatpush3.msra.mxu0 %v452_v7  ;;  %v667_v7 = vld [vmem:[#allocation14] sm:$0xff] }
  0x97   :  { %957 = vmatprep.subr.mxu1 %v1337_v0  ;;  %972 = vmatprep.subr.mxu0 %v1337_v0 }
  0x98   :  { %958 = vmatpush3.msra.mxu1 %v308_v28  ;;  %973 = vmatpush3.msra.mxu0 %v451_v8  ;;  %v589_v8 = vld [vmem:[#allocation13 + $0x78] sm:$0xff] }
  0x99   :  { %997 = vmatprep.subr.mxu1 %v1337_v0  ;;  %974 = vmatprep.subr.mxu0 %v1337_v0 }
  0x9a   :  { %975 = vmatpush3.msra.mxu0 %v450_v9  ;;  %v588_v9 = vld [vmem:[#allocation13 + $0x70] sm:$0xff] }
  0x9b   :  { %976 = vmatprep.subr.mxu0 %v1337_v0 }
  0x9c   :  { %977 = vmatpush3.msra.mxu0 %v449_v10  ;;  %v587_v10 = vld [vmem:[#allocation13 + $0x68] sm:$0xff] }
  0x9d   :  { %978 = vmatprep.subr.mxu0 %v1337_v0 }
  0x9e   :  { %979 = vmatpush3.msra.mxu0 %v448_v11  ;;  %v586_v11 = vld [vmem:[#allocation13 + $0x60] sm:$0xff] }
  0x9f   :  { %980 = vmatprep.subr.mxu0 %v1337_v0 }
  0xa0   :  { %981 = vmatpush3.msra.mxu0 %v447_v12  ;;  %v585_v12 = vld [vmem:[#allocation13 + $0x58] sm:$0xff] }
  0xa1   :  { %982 = vmatprep.subr.mxu0 %v1337_v0 }
  0xa2   :  { %983 = vmatpush3.msra.mxu0 %v446_v13  ;;  %v584_v13 = vld [vmem:[#allocation13 + $0x50] sm:$0xff] }
  0xa3   :  { %984 = vmatprep.subr.mxu0 %v1337_v0 }
  0xa4   :  { %985 = vmatpush3.msra.mxu0 %v445_v14  ;;  %v583_v14 = vld [vmem:[#allocation13 + $0x48] sm:$0xff] }
  0xa5   :  { %986 = vmatprep.subr.mxu0 %v1337_v0 }
  0xa6   :  { %987 = vmatpush3.msra.mxu0 %v444_v15  ;;  %v582_v15 = vld [vmem:[#allocation13 + $0x40] sm:$0xff] }
  0xa7   :  { %988 = vmatprep.subr.mxu0 %v1337_v0 }
  0xa8   :  { %989 = vmatpush3.msra.mxu0 %v443_v16  ;;  %v581_v16 = vld [vmem:[#allocation13 + $0x38] sm:$0xff] }
  0xa9   :  { %990 = vmatprep.subr.mxu0 %v1337_v0 }
  0xaa   :  { %991 = vmatpush3.msra.mxu0 %v442_v17  ;;  %v580_v17 = vld [vmem:[#allocation13 + $0x30] sm:$0xff] }
  0xab   :  { %992 = vmatprep.subr.mxu0 %v1337_v0 }
  0xac   :  { %993 = vmatpush3.msra.mxu0 %v441_v18  ;;  %v579_v18 = vld [vmem:[#allocation13 + $0x28] sm:$0xff] }
  0xad   :  { %1032 = vmatprep.subr.mxu0 %v1337_v0 }
 0x14c   :  { %v264_v30 = vpop.f32.mrf.mxu0 }
 0x14d   :  { %v265_v31 = vadd.f32 %v816_v29, %v264_v30 }
 0x14e   :  { %v926_v32 = vpop.f32.mrf.mxu0 }
 0x14f   :  { %v268_v33 = vrot.slane %v265_v31, 4  ;;  %v274_v34 = vmul.f32 %v265_v31, %v265_v31 }
 0x151   :  { %v269_v35 = vadd.f32 %v268_v33, %v265_v31  ;;  %v275_v36 = vrot.slane %v274_v34, 4 }
 0x153   :  { %v270_v37 = vrot.slane %v269_v35, 2  ;;  %v276_v38 = vadd.f32 %v275_v36, %v274_v34 }
 0x155   :  { %v271_v39 = vadd.f32 %v270_v37, %v269_v35  ;;  %v277_v40 = vrot.slane %v276_v38, 2 }
 0x157   :  { %v272_v41 = vrot.slane %v271_v39, 1  ;;  %v278_v42 = vadd.f32 %v277_v40, %v276_v38 }
 0x159   :  { %v273_v43 = vadd.f32 %v272_v41, %v271_v39  ;;  %v279_v44 = vrot.slane %v278_v42, 1 }
 0x15b   :  { %v280_v45 = vadd.f32 %v279_v44, %v278_v42  ;;  %v281_v46 = vmul.f32 0.125, %v273_v43  ;;  %v419_v42 = vld [vmem:[%s1618_s7] sm:$0x1] }
 0x15d   :  { %v282_v47 = vmul.f32 0.125, %v280_v45  ;;  %v283_v48 = vmul.f32 %v281_v46, %v281_v46  ;;  %v423_v45 = vld [vmem:[%s1619_s8] sm:$0x1] }
 0x15f   :  { %v284_v49 = vsub.f32 %v282_v47, %v283_v48 }
 0x161   :  { %v285_v50 = vmax.f32 %v284_v49, 0.0 }
 0x163   :  { %v287_v51 = vadd.f32 1e-05, %v285_v50 }
 0x165   :  { %1082 = vrsqrt.f32 %v287_v51 }
 0x172   :  { %v1083_v56 = vpop.eup %1082 }
 0x173   :  { %v289_v57 = vmul.f32 %v1083_v56, %v286_v54  ;;  %v682_v54 = vld [vmem:[#allocation14 + $0x78] sm:$0xff]  ;;  %v681_v56 = vld [vmem:[#allocation14 + $0x70] sm:$0xff] }
 0x175   :  { %v291_v59 = vmul.f32 %v289_v57, %v281_v46  ;;  %v297_v60 = vrot.slane %v289_v57, %v1525_v55  ;;  %v680_v57 = vld [vmem:[#allocation14 + $0x68] sm:$0xff] }
 0x177   :  { %v292_v61 = vsub.f32 %v290_v58, %v291_v59  ;;  %v299_v62 = vmul.f32 %v297_v60, %v265_v31  ;;  %v679_v58 = vld [vmem:[#allocation14 + $0x60] sm:$0xff]  ;;  %v678_v59 = vld [vmem:[#allocation14 + $0x58] sm:$0xff]  ;;  %v677_v60 = vld [vmem:[#allocation14 + $0x50] sm:$0xff] }
 0x179   :  { %v304_v63 = vrot.slane %v292_v61, %v1525_v55  ;;  %v676_v61 = vld [vmem:[#allocation14 + $0x48] sm:$0xff] }
 0x17b   :  { %v306_v1 = vadd.f32 %v304_v63, %v299_v62  ;;  %v675_v62 = vld [vmem:[#allocation14 + $0x40] sm:$0xff]  ;;  %v674_v63 = vld [vmem:[#allocation14 + $0x38] sm:$0xff] }
 0x17d   :  { %v307_v2 = vmax.f32 %v306_v1, 0.0  ;;  %v673_v1 = vld [vmem:[#allocation14 + $0x30] sm:$0xff] }
 0x17f   :  { %960 = vmatmul.mubr.f32.vlgmr.msra.gmra.mxu1 %v307_v2  ;;  %v672_v2 = vld [vmem:[#allocation14 + $0x28] sm:$0xff] }
 0x180   :  { %1029 = vmatprep.mubr.msk.f32.mxu1 %vm1338_vm0, %v1337_v0  ;;  %998 = vmatpush3.msra.mxu1 %v589_v8 }
 0x181   :  { %999 = vmatprep.subr.mxu1 %v1337_v0 }
 0x182   :  { %1000 = vmatpush3.msra.mxu1 %v588_v9 }
 0x183   :  { %1001 = vmatprep.subr.mxu1 %v1337_v0 }
 0x184   :  { %1002 = vmatpush3.msra.mxu1 %v587_v10 }
 0x185   :  { %1003 = vmatprep.subr.mxu1 %v1337_v0 }
 0x186   :  { %1004 = vmatpush3.msra.mxu1 %v586_v11 }
 0x187   :  { %1005 = vmatprep.subr.mxu1 %v1337_v0 }
 0x188   :  { %1006 = vmatpush3.msra.mxu1 %v585_v12 }
 0x189   :  { %1007 = vmatprep.subr.mxu1 %v1337_v0 }
 0x18a   :  { %1008 = vmatpush3.msra.mxu1 %v584_v13 }
 0x18b   :  { %1009 = vmatprep.subr.mxu1 %v1337_v0 }
 0x18c   :  { %1010 = vmatpush3.msra.mxu1 %v583_v14 }
 0x18d   :  { %1011 = vmatprep.subr.mxu1 %v1337_v0 }
 0x18e   :  { %1012 = vmatpush3.msra.mxu1 %v582_v15 }
 0x18f   :  { %1013 = vmatprep.subr.mxu1 %v1337_v0 }
 0x190   :  { %1014 = vmatpush3.msra.mxu1 %v581_v16 }
 0x191   :  { %1015 = vmatprep.subr.mxu1 %v1337_v0 }
 0x192   :  { %1016 = vmatpush3.msra.mxu1 %v580_v17 }
 0x193   :  { %1017 = vmatprep.subr.mxu1 %v1337_v0 }
 0x194   :  { %1018 = vmatpush3.msra.mxu1 %v579_v18 }
 0x195   :  { %1019 = vmatprep.subr.mxu1 %v1337_v0 }
 0x23f   :  { %v397_v20 = vpop.f32.mrf.mxu1 }
 0x240   :  { %v398_v21 = vadd.f32 %v818_v19, %v397_v20  ;;  %v578_v19 = vld [vmem:[#allocation13 + $0x20] sm:$0xff]  ;;  %v577_v20 = vld [vmem:[#allocation13 + $0x18] sm:$0xff] }
 0x241   :  { %v961_v22 = vpop.f32.mrf.mxu1  ;;  %1020 = vmatpush3.msra.mxu1 %v578_v19 }
 0x242   :  { %v401_v23 = vrot.slane %v398_v21, 4  ;;  %v407_v24 = vmul.f32 %v398_v21, %v398_v21  ;;  %1021 = vmatprep.subr.mxu1 %v1337_v0  ;;  %v575_v22 = vld [vmem:[#allocation13 + $0x8] sm:$0xff] }
 0x243   :  { %1022 = vmatpush3.msra.mxu1 %v577_v20 }
 0x244   :  { %v402_v25 = vadd.f32 %v401_v23, %v398_v21  ;;  %v408_v26 = vrot.slane %v407_v24, 4  ;;  %1023 = vmatprep.subr.mxu1 %v1337_v0  ;;  %v574_v23 = vld [vmem:[#allocation13] sm:$0xff] }
 0x246   :  { %v403_v27 = vrot.slane %v402_v25, 2  ;;  %v409_v28 = vadd.f32 %v408_v26, %v407_v24  ;;  %v819_v24 = vld [vmem:[#allocation11] ss:$0 sm:$0xff] }
 0x248   :  { %v404_v29 = vadd.f32 %v403_v27, %v402_v25  ;;  %v410_v30 = vrot.slane %v409_v28, 2 }
 0x24a   :  { %v405_v31 = vrot.slane %v404_v29, 1  ;;  %v411_v32 = vadd.f32 %v410_v30, %v409_v28 }
 0x24c   :  { %v406_v33 = vadd.f32 %v405_v31, %v404_v29  ;;  %v412_v34 = vrot.slane %v411_v32, 1 }
 0x24e   :  { %v413_v35 = vadd.f32 %v412_v34, %v411_v32  ;;  %v414_v36 = vmul.f32 0.125, %v406_v33 }
 0x250   :  { %v415_v37 = vmul.f32 0.125, %v413_v35  ;;  %v416_v38 = vmul.f32 %v414_v36, %v414_v36 }
 0x252   :  { %v417_v39 = vsub.f32 %v415_v37, %v416_v38 }
 0x254   :  { %v418_v40 = vmax.f32 %v417_v39, 0.0 }
 0x256   :  { %v420_v41 = vadd.f32 1e-05, %v418_v40 }
 0x258   :  { %1084 = vrsqrt.f32 %v420_v41 }
 0x265   :  { %v1085_v43 = vpop.eup %1084 }
 0x266   :  { %v422_v44 = vmul.f32 %v1085_v43, %v419_v42 }
 0x268   :  { %v430_v46 = vrot.slane %v422_v44, %v1525_v55  ;;  %v424_v47 = vmul.f32 %v422_v44, %v414_v36 }
 0x26a   :  { %v425_v48 = vsub.f32 %v423_v45, %v424_v47  ;;  %v432_v49 = vmul.f32 %v430_v46, %v398_v21  ;;  %v576_v21 = vld [vmem:[#allocation13 + $0x10] sm:$0xff]  ;;  %v761_v46 = vand.u32 127, %v294_v52  ;;  %v821_v47 = vld [vmem:[#allocation16] ss:$0 sm:$0xff] }
 0x26b   :  { %1024 = vmatpush3.msra.mxu1 %v576_v21 }
 0x26c   :  { %v437_v50 = vrot.slane %v425_v48, %v1525_v55  ;;  %1025 = vmatprep.subr.mxu1 %v1337_v0  ;;  %vm762_vm2 = vcmp.lt.s32.totalorder %v761_v46, 2 }
 0x26d   :  { %1026 = vmatpush3.msra.mxu1 %v575_v22 }
 0x26e   :  { %v439_v51 = vadd.f32 %v437_v50, %v432_v49  ;;  %1027 = vmatprep.subr.mxu1 %v1337_v0 }
 0x26f   :  { %1028 = vmatpush3.msra.mxu1 %v574_v23 }
 0x270   :  { %v440_v53 = vmax.f32 %v439_v51, 0.0 }
 0x272   :  { %995 = vmatmul.mubr.f32.vlgmr.msra.gmra.mxu0 %v440_v53  ;;  %777 = vst [vmem:[#allocation18] sm:$0xff] %v440_v53 }
 0x273   :  { %1033 = vmatpush3.msra.mxu0 %v682_v54  ;;  %1064 = vmatprep.mubr.msk.f32.mxu0 %vm1338_vm0, %v1337_v0 }
 0x274   :  { %1034 = vmatprep.subr.mxu0 %v1337_v0 }
 0x275   :  { %1035 = vmatpush3.msra.mxu0 %v681_v56 }
 0x276   :  { %1036 = vmatprep.subr.mxu0 %v1337_v0 }
 0x277   :  { %1037 = vmatpush3.msra.mxu0 %v680_v57  ;;  %v556_v57 = vld [vmem:[%s1623_s12] sm:$0x1] }
 0x278   :  { %1038 = vmatprep.subr.mxu0 %v1337_v0 }
 0x279   :  { %1039 = vmatpush3.msra.mxu0 %v679_v58 }
 0x27a   :  { %1040 = vmatprep.subr.mxu0 %v1337_v0 }
 0x27b   :  { %1041 = vmatpush3.msra.mxu0 %v678_v59 }
 0x27c   :  { %1042 = vmatprep.subr.mxu0 %v1337_v0 }
 0x27d   :  { %1043 = vmatpush3.msra.mxu0 %v677_v60 }
 0x27e   :  { %1044 = vmatprep.subr.mxu0 %v1337_v0 }
 0x27f   :  { %1045 = vmatpush3.msra.mxu0 %v676_v61 }
 0x280   :  { %1046 = vmatprep.subr.mxu0 %v1337_v0 }
 0x281   :  { %1047 = vmatpush3.msra.mxu0 %v675_v62 }
 0x282   :  { %1048 = vmatprep.subr.mxu0 %v1337_v0 }
 0x283   :  { %1049 = vmatpush3.msra.mxu0 %v674_v63 }
 0x284   :  { %1050 = vmatprep.subr.mxu0 %v1337_v0 }
 0x285   :  { %1051 = vmatpush3.msra.mxu0 %v673_v1 }
 0x286   :  { %1052 = vmatprep.subr.mxu0 %v1337_v0 }
 0x287   :  { %1053 = vmatpush3.msra.mxu0 %v672_v2 }
 0x288   :  { %1054 = vmatprep.subr.mxu0 %v1337_v0 }
 0x289   :  { %1055 = vmatpush3.msra.mxu0 %v671_v3 }
 0x28a   :  { %1056 = vmatprep.subr.mxu0 %v1337_v0 }
 0x28b   :  { %1057 = vmatpush3.msra.mxu0 %v670_v4 }
 0x28c   :  { %1058 = vmatprep.subr.mxu0 %v1337_v0 }
 0x28d   :  { %1059 = vmatpush3.msra.mxu0 %v669_v5 }
 0x28e   :  { %1060 = vmatprep.subr.mxu0 %v1337_v0 }
 0x28f   :  { %1061 = vmatpush3.msra.mxu0 %v668_v6 }
 0x290   :  { %1062 = vmatprep.subr.mxu0 %v1337_v0 }
 0x291   :  { %1063 = vmatpush3.msra.mxu0 %v667_v7 }
 0x292   :  { %1065 = vmatmul.mubr.f32.vlgmr.msra.gmra.mxu0 %v440_v53  ;;  %v552_v53 = vld [vmem:[%s1622_s11] sm:$0x1]  ;;  %s1339_s11 = smov [#allocation18]  }
 0x293   :  { %s795_s10 = sshll.u32 %s1339_s11, 4  ;;  %s796_s10 = int_to_ptr.vmem [resolvable:$true] %s795_s10 }
 0x294   :  { %s1272_s12 = scalar_lea.vmem %s796_s10, 128  ;;  %p1277_p4 = scmp.lt.s32.totalorder %s796_s10, %s796_s10 }
 0x295   :  { %p1273_p3 = scmp.ne.s32.totalorder %s796_s10, %s1272_s12  ;;  %p1278_p5 = scmp.lt.s32.totalorder %s1272_s12, %s1272_s12 }
 0x297   :  { %p1279_p6 = por %p1278_p5, %p1277_p4 }
 0x299   :  { %p1280_p7 = pnand %p1279_p6, %p1273_p3 }
 0x332   :  { %v530_v25 = vpop.f32.mrf.mxu0 }
 0x333   :  { %v531_v26 = vadd.f32 %v819_v24, %v530_v25 }
 0x334   :  { %v996_v27 = vpop.f32.mrf.mxu0 }
 0x335   :  { %v534_v28 = vrot.slane %v531_v26, 4  ;;  %v540_v29 = vmul.f32 %v531_v26, %v531_v26 }
 0x337   :  { %v535_v30 = vadd.f32 %v534_v28, %v531_v26  ;;  %v541_v31 = vrot.slane %v540_v29, 4 }
 0x339   :  { %v536_v32 = vrot.slane %v535_v30, 2  ;;  %v542_v33 = vadd.f32 %v541_v31, %v540_v29 }
 0x33b   :  { %v537_v34 = vadd.f32 %v536_v32, %v535_v30  ;;  %v543_v35 = vrot.slane %v542_v33, 2 }
 0x33d   :  { %v538_v36 = vrot.slane %v537_v34, 1  ;;  %v544_v37 = vadd.f32 %v543_v35, %v542_v33 }
 0x33f   :  { %v539_v38 = vadd.f32 %v538_v36, %v537_v34  ;;  %v545_v39 = vrot.slane %v544_v37, 1 }
 0x341   :  { %v546_v40 = vadd.f32 %v545_v39, %v544_v37  ;;  %v547_v41 = vmul.f32 0.125, %v539_v38 }
 0x343   :  { %v548_v0 = vmul.f32 0.125, %v546_v40  ;;  %v549_v42 = vmul.f32 %v547_v41, %v547_v41 }
 0x345   :  { %v550_v43 = vsub.f32 %v548_v0, %v549_v42 }
 0x347   :  { %v551_v44 = vmax.f32 %v550_v43, 0.0 }
 0x349   :  { %v553_v45 = vadd.f32 1e-05, %v551_v44 }
 0x34b   :  { %1086 = vrsqrt.f32 %v553_v45 }
 0x352   :  { %v756_v48 = vpop.f32.mrf.mxu0 }
 0x353   :  { %v757_v49 = vadd.f32 %v821_v47, %v756_v48 }
 0x354   :  { %v1066_v50 = vpop.f32.mrf.mxu0 }
 0x355   :  { %v763_v51 = vsel %vm762_vm2, %v757_v49, -1e+30 }
 0x356   :  { %764 = vmax.xlane.f32.xlu0 %v763_v51 }
 0x358   :  { %v1087_v54 = vpop.eup %1086 }
 0x359   :  { %v555_v56 = vmul.f32 %v1087_v54, %v552_v53 }
 0x35b   :  { %v563_v58 = vrot.slane %v555_v56, %v1525_v55  ;;  %v557_v52 = vmul.f32 %v555_v56, %v547_v41 }
 0x35d   :  { %v558_v59 = vsub.f32 %v556_v57, %v557_v52  ;;  %v565_v60 = vmul.f32 %v563_v58, %v531_v26 }
 0x35f   :  { %v570_v61 = vrot.slane %v558_v59, %v1525_v55 }
 0x361   :  { %v572_v62 = vadd.f32 %v570_v61, %v565_v60 }
 0x363   :  { %v573_v63 = vmax.f32 %v572_v62, 0.0 }
 0x365   :  { %1030 = vmatmul.mubr.f32.vlgmr.msra.gmra.mxu1 %v573_v63 }
 0x3df   :  { %v765_v1 = vpop.xlane.xlu0 %764 }
 0x3e0   :  { %v766_v2 = vsub.f32 %v763_v51, %v765_v1 }
 0x3e2   :  { %v767_v3 = vmul.f32 1.442695, %v766_v2 }
 0x3e4   :  { %1088 = vpow2.f32 %v767_v3 }
 0x3f1   :  { %v1089_v4 = vpop.eup %1088 }
 0x3f2   :  { %769 = vadd.xlane.f32.xlu0 %v1089_v4 }
 0x3f3   :  { %1283 = shalt.err (!%p1280_p7)
}
 0x3f4   :  { %798 = dma.vmem_to_hbm [thread:$0]  %s796_s10, 128, %s1629_s18, [#allocation19]   ;;  %v820_v55 = vld [vmem:[%s1625_s14] ss:$0 sm:$0xff] }
 0x3f5   :  { %s1340_s9 = smov [#allocation17]  }
 0x3f6   :  { %s785_s20 = sshll.u32 %s1340_s9, 4  ;;  %s786_s20 = int_to_ptr.vmem [resolvable:$true] %s785_s20 }
 0x3f7   :  { %s1292_s30 = scalar_lea.vmem %s786_s20, 128  ;;  %p1297_p9 = scmp.lt.s32.totalorder %s786_s20, %s786_s20 }
 0x3f8   :  { %p1293_p8 = scmp.ne.s32.totalorder %s786_s20, %s1292_s30  ;;  %p1298_p10 = scmp.lt.s32.totalorder %s1292_s30, %s1292_s30 }
 0x3fa   :  { %p1299_p11 = por %p1298_p10, %p1297_p9 }
 0x3fc   :  { %p1300_p12 = pnand %p1299_p11, %p1293_p8 }
 0x425   :  { %v663_v5 = vpop.f32.mrf.mxu1 }
 0x426   :  { %v664_v6 = vadd.f32 %v820_v55, %v663_v5 }
 0x427   :  { %v1031_v7 = vpop.f32.mrf.mxu1 }
 0x428   :  { %776 = vst [vmem:[#allocation17] sm:$0xff] %v664_v6 }
 0x429   :  { %1303 = shalt.err (!%p1300_p12)
}
 0x42a   :  { %788 = dma.vmem_to_hbm [thread:$0]  %s786_s20, 128, %s1628_s17, [#allocation4]  }
 0x47b   :  { %v770_v8 = vpop.xlane.xlu0 %769 }
 0x47c   :  { %1090 = vrcp.f32 %v770_v8 }
 0x489   :  { %v1091_v9 = vpop.eup %1090 }
 0x48a   :  { %v772_v10 = vmul.f32 %v1091_v9, %v770_v8 }
 0x48c   :  { %v773_v11 = vsub.f32 2.0, %v772_v10 }
 0x48e   :  { %v774_v12 = vmul.f32 %v1091_v9, %v773_v11 }
 0x490   :  { %v775_v13 = vmul.f32 %v1089_v4, %v774_v12 }
 0x492   :  { %778 = vst [vmem:[%s1630_s19] sm:$0xff] %v775_v13 }
 0x493   :  { %1322 = dma.done.wait [#allocation4], 128  }
 0x494   :  { %1323 = vsyncadd [#allocation4], 4294967168 }
 0x495   :  { %1324 = dma.done.wait [#allocation19], 128  }
 0x496   :  { %1325 = vsyncadd [#allocation19], 4294967168 }
 0x497   :  { %809 = vsyncpa [#allocation3], 1 }
 0x498   :  { %810 = vsyncpa [#allocation6], 1 }
 0x499   :  { %811 = vsyncpa [#allocation9], 1 }
 0x49a   :  { %812 = vsyncpa [#allocation12], 1 }
 0x49b   :  { %813 = vsyncpa [#allocation15], 1 }
 0x49c   :  { %814 = vsyncpa [#allocation4], 1 }
 0x49d   :  { %815 = vsyncpa [#allocation19], 1 }

</bundles_post_ra>
